<compile_context>
chip_gen: v5e
topology: v5e:2x2
jax: 0.10.0
libtpu: 0.0.40
codegen_flags: <defaults>
</compile_context>

<pallas_src>
import functools

import jax
import jax.numpy as jnp
from jax import lax
from jax.experimental import pallas as pl
from jax.experimental.pallas import tpu as pltpu

BN_EPS = 1e-5
LANE = 128
SUBLANE = 8
TILE_M_MAX = 1024                  # rows per grid step (review: 512-1024)
FUSED_VMEM_BUDGET = 24 * 2**20     # below this working set -> single fused kernel
VMEM_CAP = 48 * 2**20              # stay well under v7x's 64 MiB physical VMEM


def _round_up(v, m):
    return ((v + m - 1) // m) * m


def _cdiv(a, b):
    return (a + b - 1) // b


# --------------------------------------------------------------------------- #
# Kernels
# --------------------------------------------------------------------------- #
def _fused_kernel(x_ref, w1t_ref, gamma_ref, beta_ref, w2t_ref, b2_ref, out_ref,
                  *, n_valid):
    """Whole forward in one VMEM-resident step: matmul -> BN(batch) -> ReLU -> matmul."""
    h = jnp.dot(x_ref[...], w1t_ref[...], preferred_element_type=jnp.float32)
    if n_valid == h.shape[0]:
        mean = jnp.mean(h, axis=0, keepdims=True)
        dev = h - mean
        var = jnp.mean(dev * dev, axis=0, keepdims=True)
    else:  # mask zero-padded rows out of the batch statistics
        rows = lax.broadcasted_iota(jnp.int32, h.shape, 0)
        valid = rows < n_valid
        inv_n = jnp.float32(1.0 / n_valid)
        mean = jnp.sum(jnp.where(valid, h, 0.0), axis=0, keepdims=True) * inv_n
        dev = jnp.where(valid, h - mean, 0.0)
        var = jnp.sum(dev * dev, axis=0, keepdims=True) * inv_n
    inv_std = lax.rsqrt(var + BN_EPS)
    scale = inv_std * gamma_ref[...]              # folded BN scale  [1, nhid_p]
    shift = beta_ref[...] - mean * scale          # folded BN shift  [1, nhid_p]
    hn = jnp.maximum(h * scale + shift, 0.0)
    out = jnp.dot(hn.astype(w2t_ref.dtype), w2t_ref[...],
                  preferred_element_type=jnp.float32)
    out_ref[...] = (out + b2_ref[...]).astype(out_ref.dtype)


def _stats_kernel(x_ref, w1t_ref, stats_ref, *, n_total, tile_m):
    """Pass 1: layer1 matmul + per-tile centered stats (sum, M2); h is NOT stored."""
    i = pl.program_id(0)
    h = jnp.dot(x_ref[...], w1t_ref[...], preferred_element_type=jnp.float32)
    # Valid-row count for this tile (last tile may contain zero-padded rows).
    n_i = jnp.minimum(jnp.int32(tile_m), jnp.int32(n_total) - i * tile_m)
    rows = lax.broadcasted_iota(jnp.int32, h.shape, 0)
    valid = rows < n_i
    hm = jnp.where(valid, h, 0.0)
    # Column sums on the VPU (keeps the MXU free; M=1 stats matmuls are a tax on v5e).
    s = jnp.sum(hm, axis=0, keepdims=True)                         # [1, nhid_p]
    inv_n = 1.0 / jnp.maximum(n_i, 1).astype(jnp.float32)
    mean_i = s * inv_n
    dev = jnp.where(valid, h - mean_i, 0.0)
    m2 = jnp.sum(dev * dev, axis=0, keepdims=True)                 # [1, nhid_p]
    stats_ref[...] = jnp.concatenate([s, m2], axis=0)[None]        # [1, 2, nhid_p]


def _out_kernel(x_ref, w1t_ref, scale_ref, shift_ref, w2t_ref, b2_ref, out_ref):
    """Pass 2: recompute h (no HBM round trip), apply folded BN + ReLU, layer2."""
    h = jnp.dot(x_ref[...], w1t_ref[...], preferred_element_type=jnp.float32)
    hn = jnp.maximum(h * scale_ref[...] + shift_ref[...], 0.0)
    out = jnp.dot(hn.astype(w2t_ref.dtype), w2t_ref[...],
                  preferred_element_type=jnp.float32)
    out_ref[...] = (out + b2_ref[...]).astype(out_ref.dtype)


# --------------------------------------------------------------------------- #
# Wrapper
# --------------------------------------------------------------------------- #
def prepare_params(w1, b1, gamma, beta, w2, b2, compute_dtype=jnp.bfloat16):
    """One-time parameter preprocessing (hoisted out of the per-call path).

    layer1 bias b1 is accepted for interface parity but dropped: training-mode
    BatchNorm with batch statistics immediately follows layer1 and exactly
    cancels any constant row offset.
    """
    del b1
    nhid, nfeat = w1.shape
    nclass = w2.shape[0]
    nfeat_p = _round_up(nfeat, SUBLANE)          # contraction dim: sublane-align only
    nhid_p = _round_up(nhid, LANE)               # lane dims: 128 for unmasked stores
    nclass_p = _round_up(nclass, LANE)
    w1t = jnp.pad(w1.T, ((0, nfeat_p - nfeat), (0, nhid_p - nhid))).astype(compute_dtype)
    w2t = jnp.pad(w2.T, ((0, nhid_p - nhid), (0, nclass_p - nclass))).astype(compute_dtype)
    gamma_p = jnp.pad(gamma.astype(jnp.float32), (0, nhid_p - nhid)).reshape(1, nhid_p)
    beta_p = jnp.pad(beta.astype(jnp.float32), (0, nhid_p - nhid)).reshape(1, nhid_p)
    b2_p = jnp.pad(b2.astype(jnp.float32), (0, nclass_p - nclass)).reshape(1, nclass_p)
    return dict(w1t=w1t, w2t=w2t, gamma=gamma_p, beta=beta_p, b2=b2_p,
                nfeat=nfeat, nhid=nhid, nclass=nclass, compute_dtype=compute_dtype)


def mlp_forward(x, params, out_dtype=None, force_tiled=False):
    """Linear -> BatchNorm1d(training batch stats) -> ReLU -> Linear."""
    cd = params["compute_dtype"]
    w1t, w2t = params["w1t"], params["w2t"]
    gamma, beta, b2 = params["gamma"], params["beta"], params["b2"]
    nclass = params["nclass"]
    N, nfeat = x.shape
    nfeat_p, nhid_p = w1t.shape
    nclass_p = w2t.shape[1]
    out_dtype = x.dtype if out_dtype is None else out_dtype

    cd_bytes = jnp.dtype(cd).itemsize
    out_bytes = jnp.dtype(out_dtype).itemsize
    resident = ((nfeat_p * nhid_p + nhid_p * nclass_p) * cd_bytes
                + nclass_p * 4 + 2 * nhid_p * 4)
    n_pad8 = _round_up(max(N, SUBLANE), SUBLANE)
    # VMEM estimate for the fused path: resident params + x/out tiles + fp32 temps.
    fused_bytes = resident + n_pad8 * (nfeat_p * cd_bytes + nclass_p * out_bytes
                                       + 3 * nhid_p * 4)

    # ---------------- fused single-step path (small working sets) ---------------- #
    if not force_tiled and fused_bytes <= FUSED_VMEM_BUDGET:
        x_p = jnp.pad(x, ((0, n_pad8 - N), (0, nfeat_p - nfeat))).astype(cd)
        vmem_limit = int(min(VMEM_CAP, max(2 * fused_bytes, 16 * 2**20)))
        out_pad = pl.pallas_call(
            functools.partial(_fused_kernel, n_valid=N),
            out_shape=jax.ShapeDtypeStruct((n_pad8, nclass_p), out_dtype),
            grid=(1,),
            in_specs=[
                pl.BlockSpec((n_pad8, nfeat_p), lambda i: (0, 0)),
                pl.BlockSpec((nfeat_p, nhid_p), lambda i: (0, 0)),
                pl.BlockSpec((1, nhid_p), lambda i: (0, 0)),
                pl.BlockSpec((1, nhid_p), lambda i: (0, 0)),
                pl.BlockSpec((nhid_p, nclass_p), lambda i: (0, 0)),
                pl.BlockSpec((1, nclass_p), lambda i: (0, 0)),
            ],
            out_specs=pl.BlockSpec((n_pad8, nclass_p), lambda i: (0, 0)),
            compiler_params=pltpu.CompilerParams(
                dimension_semantics=("arbitrary",),
                vmem_limit_bytes=vmem_limit),
        )(x_p, w1t, gamma, beta, w2t, b2)
        return out_pad[:N, :nclass]

    # -------------------------- two-pass row-tiled path -------------------------- #
    # Per-row streamed bytes (double-buffered x + out tiles, fp32 h/hn temps).
    per_row = 2 * nfeat_p * cd_bytes + 2 * nclass_p * out_bytes + 3 * nhid_p * 4
    tile_m = min(TILE_M_MAX, _round_up(N, SUBLANE))
    if _cdiv(N, tile_m) < 2:                      # keep >=2 tiles for both TensorCores
        tile_m = max(SUBLANE, _round_up(_cdiv(N, 2), SUBLANE))
    while tile_m > SUBLANE and 2 * resident + tile_m * per_row > VMEM_CAP:
        tile_m = max(SUBLANE, _round_up(tile_m // 2, SUBLANE))
    n_pad = _round_up(N, tile_m)
    num_tiles = n_pad // tile_m
    vmem_limit = int(min(VMEM_CAP,
                         max(2 * resident + tile_m * per_row + (2 << 20), 16 * 2**20)))
    cp = pltpu.CompilerParams(dimension_semantics=("parallel",),
                              vmem_limit_bytes=vmem_limit)

    x_p = jnp.pad(x, ((0, n_pad - N), (0, nfeat_p - nfeat))).astype(cd)

    # Pass 1: per-tile centered stats only (h never written to HBM).
    stats = pl.pallas_call(
        functools.partial(_stats_kernel, n_total=N, tile_m=tile_m),
        out_shape=jax.ShapeDtypeStruct((num_tiles, 2, nhid_p), jnp.float32),
        grid=(num_tiles,),
        in_specs=[
            pl.BlockSpec((tile_m, nfeat_p), lambda i: (i, 0)),
            pl.BlockSpec((nfeat_p, nhid_p), lambda i: (0, 0)),   # resident weights
        ],
        out_specs=pl.BlockSpec((1, 2, nhid_p), lambda i: (i, 0, 0)),
        compiler_params=cp,
    )(x_p, w1t)

    # Tiny cross-tile merge (Chan parallel-variance, fp32) + BN fold in plain JAX.
    counts = jnp.clip(N - jnp.arange(num_tiles) * tile_m, 1, tile_m).astype(jnp.float32)
    sums = stats[:, 0, :]                                    # [num_tiles, nhid_p]
    m2s = stats[:, 1, :]                                     # [num_tiles, nhid_p]
    mean = jnp.sum(sums, axis=0, keepdims=True) / N          # [1, nhid_p]
    tile_means = sums / counts[:, None]
    total_m2 = (jnp.sum(m2s, axis=0, keepdims=True)
                + jnp.sum(counts[:, None] * (tile_means - mean) ** 2,
                          axis=0, keepdims=True))
    var = total_m2 / N                                       # biased, as BatchNorm1d
    inv_std = lax.rsqrt(var + BN_EPS)
    scale = inv_std * gamma                                  # [1, nhid_p]
    shift = beta - mean * scale                              # [1, nhid_p]

    # Pass 2: recompute h in-kernel, normalize + ReLU + layer2 matmul.
    out_pad = pl.pallas_call(
        _out_kernel,
        out_shape=jax.ShapeDtypeStruct((n_pad, nclass_p), out_dtype),
        grid=(num_tiles,),
        in_specs=[
            pl.BlockSpec((tile_m, nfeat_p), lambda i: (i, 0)),
            pl.BlockSpec((nfeat_p, nhid_p), lambda i: (0, 0)),   # resident weights
            pl.BlockSpec((1, nhid_p), lambda i: (0, 0)),
            pl.BlockSpec((1, nhid_p), lambda i: (0, 0)),
            pl.BlockSpec((nhid_p, nclass_p), lambda i: (0, 0)),  # resident weights
            pl.BlockSpec((1, nclass_p), lambda i: (0, 0)),
        ],
        out_specs=pl.BlockSpec((tile_m, nclass_p), lambda i: (i, 0)),
        compiler_params=cp,
    )(x_p, w1t, scale, shift, w2t, b2)

    return out_pad[:N, :nclass]


# --------------------------------------------------------------------------- #
# Reference / init
# --------------------------------------------------------------------------- #
def init_params(key, nfeat, nhid, nclass):
    """nn.Linear-style uniform +-1/sqrt(fan_in); BatchNorm1d defaults gamma=1, beta=0."""
    k1, k2, k3, k4 = jax.random.split(key, 4)
    lim1 = 1.0 / jnp.sqrt(nfeat)
    lim2 = 1.0 / jnp.sqrt(nhid)
    w1 = jax.random.uniform(k1, (nhid, nfeat), jnp.float32, -lim1, lim1)
    b1 = jax.random.uniform(k2, (nhid,), jnp.float32, -lim1, lim1)
    w2 = jax.random.uniform(k3, (nclass, nhid), jnp.float32, -lim2, lim2)
    b2 = jax.random.uniform(k4, (nclass,), jnp.float32, -lim2, lim2)
    gamma = jnp.ones((nhid,), jnp.float32)
    beta = jnp.zeros((nhid,), jnp.float32)
    return w1, b1, gamma, beta, w2, b2


def mlp_ref(x, w1, b1, gamma, beta, w2, b2):
    """Pure-JAX fp32 reference matching the PyTorch forward (training-mode BN)."""
    h = x @ w1.T + b1
    mean = h.mean(axis=0, keepdims=True)
    var = ((h - mean) ** 2).mean(axis=0, keepdims=True)
    h = (h - mean) / jnp.sqrt(var + BN_EPS) * gamma + beta
    h = jnp.maximum(h, 0.0)
    return h @ w2.T + b2


if __name__ == "__main__":
    # Small shapes consistent with the module's forward: N nodes x nfeat features.
    N, nfeat, nhid, nclass = 64, 16, 32, 8

    key = jax.random.PRNGKey(0)
    kx, kp = jax.random.split(key)
    x = jax.random.normal(kx, (N, nfeat), jnp.float32)
    raw = init_params(kp, nfeat, nhid, nclass)
    ref = mlp_ref(x, *raw)

    # fp32 compute path: tight numerics check on both the fused and tiled paths.
    p32 = prepare_params(*raw, compute_dtype=jnp.float32)
    out_f32 = jax.block_until_ready(mlp_forward(x, p32))
    out_f32_t = jax.block_until_ready(mlp_forward(x, p32, force_tiled=True))
    assert out_f32.shape == (N, nclass)
    assert jnp.allclose(out_f32, ref, atol=1e-4, rtol=1e-4), "fp32 fused mismatch"
    assert jnp.allclose(out_f32_t, ref, atol=1e-4, rtol=1e-4), "fp32 tiled mismatch"

    # bf16 MXU path (production config): looser tolerance for bf16 operand rounding.
    pbf16 = prepare_params(*raw, compute_dtype=jnp.bfloat16)
    out_bf16 = jax.block_until_ready(mlp_forward(x, pbf16))
    out_bf16_t = jax.block_until_ready(mlp_forward(x, pbf16, force_tiled=True))
    assert out_bf16.shape == (N, nclass)
    assert jnp.allclose(out_bf16, ref, atol=8e-2, rtol=8e-2), "bf16 fused mismatch"
    assert jnp.allclose(out_bf16_t, ref, atol=8e-2, rtol=8e-2), "bf16 tiled mismatch"

    print("KERNEL_OK")
</pallas_src>

<mosaic_0001>
module attributes {stable_mosaic.version = 11 : i64} {
  func.func @_fused_kernel(%arg0: i32, %arg1: memref<64x16xf32, #tpu.memory_space<vmem>>, %arg2: memref<16x128xf32, #tpu.memory_space<vmem>>, %arg3: memref<1x128xf32, #tpu.memory_space<vmem>>, %arg4: memref<1x128xf32, #tpu.memory_space<vmem>>, %arg5: memref<128x128xf32, #tpu.memory_space<vmem>>, %arg6: memref<1x128xf32, #tpu.memory_space<vmem>>, %arg7: memref<64x128xf32, #tpu.memory_space<vmem>>) attributes {dimension_semantics = [#tpu.dimension_semantics<arbitrary>], iteration_bounds = array<i64: 1>, scalar_prefetch = 0 : i64, scratch_operands = 0 : i64, tpu.core_type = #tpu.core_type<tc>, window_params = [{pipeline_mode = #tpu.pipeline_mode<synchronous>, transform_indices = @transform_0, window_bounds = array<i64: 64, 16>}, {pipeline_mode = #tpu.pipeline_mode<synchronous>, transform_indices = @transform_1, window_bounds = array<i64: 16, 128>}, {pipeline_mode = #tpu.pipeline_mode<synchronous>, transform_indices = @transform_2, window_bounds = array<i64: 1, 128>}, {pipeline_mode = #tpu.pipeline_mode<synchronous>, transform_indices = @transform_3, window_bounds = array<i64: 1, 128>}, {pipeline_mode = #tpu.pipeline_mode<synchronous>, transform_indices = @transform_4, window_bounds = array<i64: 128, 128>}, {pipeline_mode = #tpu.pipeline_mode<synchronous>, transform_indices = @transform_5, window_bounds = array<i64: 1, 128>}, {pipeline_mode = #tpu.pipeline_mode<synchronous>, transform_indices = @transform_6, window_bounds = array<i64: 64, 128>}]} {
    %c0 = arith.constant 0 : index
    %c0_0 = arith.constant 0 : index
    %0 = vector.load %arg1[%c0, %c0_0] : memref<64x16xf32, #tpu.memory_space<vmem>>, vector<64x16xf32>
    %c0_1 = arith.constant 0 : index
    %c0_2 = arith.constant 0 : index
    %1 = vector.load %arg2[%c0_1, %c0_2] : memref<16x128xf32, #tpu.memory_space<vmem>>, vector<16x128xf32>
    %cst = arith.constant dense<0.000000e+00> : vector<64x128xf32>
    %2 = tpu.matmul %0, %1, %cst {dimension_numbers = #tpu.dot_dimension_numbers<[1], [0], [0], [1], [0, 0, 1, 1], [], []>} : vector<64x16xf32>, vector<16x128xf32>, vector<64x128xf32> -> vector<64x128xf32>
    %cst_3 = arith.constant dense<0.000000e+00> : vector<128xf32>
    %3 = vector.multi_reduction <add>, %2, %cst_3 [0] : vector<64x128xf32> to vector<128xf32>
    %4 = vector.shape_cast %3 : vector<128xf32> to vector<1x128xf32>
    %cst_4 = arith.constant 6.400000e+01 : f32
    %5 = vector.broadcast %cst_4 : f32 to vector<1x128xf32>
    %6 = arith.divf %4, %5 : vector<1x128xf32>
    %7 = vector.broadcast %6 : vector<1x128xf32> to vector<64x128xf32>
    %8 = arith.subf %2, %7 : vector<64x128xf32>
    %9 = arith.mulf %8, %8 : vector<64x128xf32>
    %cst_5 = arith.constant dense<0.000000e+00> : vector<128xf32>
    %10 = vector.multi_reduction <add>, %9, %cst_5 [0] : vector<64x128xf32> to vector<128xf32>
    %11 = vector.shape_cast %10 : vector<128xf32> to vector<1x128xf32>
    %cst_6 = arith.constant 6.400000e+01 : f32
    %12 = vector.broadcast %cst_6 : f32 to vector<1x128xf32>
    %13 = arith.divf %11, %12 : vector<1x128xf32>
    %cst_7 = arith.constant 9.99999974E-6 : f32
    %14 = vector.broadcast %cst_7 : f32 to vector<1x128xf32>
    %15 = arith.addf %13, %14 : vector<1x128xf32>
    %16 = math.rsqrt %15 : vector<1x128xf32>
    %c0_8 = arith.constant 0 : index
    %c0_9 = arith.constant 0 : index
    %17 = vector.load %arg3[%c0_8, %c0_9] : memref<1x128xf32, #tpu.memory_space<vmem>>, vector<1x128xf32>
    %18 = arith.mulf %16, %17 : vector<1x128xf32>
    %c0_10 = arith.constant 0 : index
    %c0_11 = arith.constant 0 : index
    %19 = vector.load %arg4[%c0_10, %c0_11] : memref<1x128xf32, #tpu.memory_space<vmem>>, vector<1x128xf32>
    %20 = arith.mulf %6, %18 : vector<1x128xf32>
    %21 = arith.subf %19, %20 : vector<1x128xf32>
    %22 = vector.broadcast %18 : vector<1x128xf32> to vector<64x128xf32>
    %23 = arith.mulf %2, %22 : vector<64x128xf32>
    %24 = vector.broadcast %21 : vector<1x128xf32> to vector<64x128xf32>
    %25 = arith.addf %23, %24 : vector<64x128xf32>
    %cst_12 = arith.constant 0.000000e+00 : f32
    %26 = vector.broadcast %cst_12 : f32 to vector<64x128xf32>
    %27 = arith.maximumf %25, %26 : vector<64x128xf32>
    %c0_13 = arith.constant 0 : index
    %c0_14 = arith.constant 0 : index
    %28 = vector.load %arg5[%c0_13, %c0_14] : memref<128x128xf32, #tpu.memory_space<vmem>>, vector<128x128xf32>
    %cst_15 = arith.constant dense<0.000000e+00> : vector<64x128xf32>
    %29 = tpu.matmul %27, %28, %cst_15 {dimension_numbers = #tpu.dot_dimension_numbers<[1], [0], [0], [1], [0, 0, 1, 1], [], []>} : vector<64x128xf32>, vector<128x128xf32>, vector<64x128xf32> -> vector<64x128xf32>
    %c0_16 = arith.constant 0 : index
    %c0_17 = arith.constant 0 : index
    %30 = vector.load %arg6[%c0_16, %c0_17] : memref<1x128xf32, #tpu.memory_space<vmem>>, vector<1x128xf32>
    %31 = vector.broadcast %30 : vector<1x128xf32> to vector<64x128xf32>
    %32 = arith.addf %29, %31 : vector<64x128xf32>
    %c0_18 = arith.constant 0 : index
    %c0_19 = arith.constant 0 : index
    %33 = vector.load %arg7[%c0_18, %c0_19] : memref<64x128xf32, #tpu.memory_space<vmem>>, vector<64x128xf32>
    tpu.vector_store %arg7[%c0_18, %c0_19], %32 {strides = array<i32>} : memref<64x128xf32, #tpu.memory_space<vmem>>, vector<64x128xf32>,
    return
  }
  func.func @transform_0(%arg0: i32) -> (i32, i32) {
    %c0_i32 = arith.constant 0 : i32
    %c0_i32_0 = arith.constant 0 : i32
    %c0_i32_1 = arith.constant 0 : i32
    return %c0_i32, %c0_i32_0 : i32, i32
  }
  func.func @transform_1(%arg0: i32) -> (i32, i32) {
    %c0_i32 = arith.constant 0 : i32
    %c0_i32_0 = arith.constant 0 : i32
    %c0_i32_1 = arith.constant 0 : i32
    return %c0_i32, %c0_i32_0 : i32, i32
  }
  func.func @transform_2(%arg0: i32) -> (i32, i32) {
    %c0_i32 = arith.constant 0 : i32
    %c0_i32_0 = arith.constant 0 : i32
    %c0_i32_1 = arith.constant 0 : i32
    return %c0_i32, %c0_i32_0 : i32, i32
  }
  func.func @transform_3(%arg0: i32) -> (i32, i32) {
    %c0_i32 = arith.constant 0 : i32
    %c0_i32_0 = arith.constant 0 : i32
    %c0_i32_1 = arith.constant 0 : i32
    return %c0_i32, %c0_i32_0 : i32, i32
  }
  func.func @transform_4(%arg0: i32) -> (i32, i32) {
    %c0_i32 = arith.constant 0 : i32
    %c0_i32_0 = arith.constant 0 : i32
    %c0_i32_1 = arith.constant 0 : i32
    return %c0_i32, %c0_i32_0 : i32, i32
  }
  func.func @transform_5(%arg0: i32) -> (i32, i32) {
    %c0_i32 = arith.constant 0 : i32
    %c0_i32_0 = arith.constant 0 : i32
    %c0_i32_1 = arith.constant 0 : i32
    return %c0_i32, %c0_i32_0 : i32, i32
  }
  func.func @transform_6(%arg0: i32) -> (i32, i32) {
    %c0_i32 = arith.constant 0 : i32
    %c0_i32_0 = arith.constant 0 : i32
    %c0_i32_1 = arith.constant 0 : i32
    return %c0_i32, %c0_i32_0 : i32, i32
  }
}

</mosaic_0001>

<bundles_post_ra>
// kernel: tpu_custom_call.1
= control target key start
LH: loop header
LB: loop body
LE: loop exit
PB: predicated region body
PF: predicated region fallthrough
CT: control target
= control target key end

     0   :  { %11 = vsyncpa [#allocation3], 0  ;;  %s555_s0 = inlined_call_operand.vmem [shape: f32[64,16], index: 0, kind: input, shape index: {}]   ;;  %s556_s1 = inlined_call_operand.vmem [shape: f32[16,128], index: 1, kind: input, shape index: {}]   ;;  %s557_s2 = inlined_call_operand.vmem [shape: f32[1,128], index: 2, kind: input, shape index: {}]   ;;  %s558_s3 = inlined_call_operand.vmem [shape: f32[1,128], index: 3, kind: input, shape index: {}]   ;;  %s559_s4 = inlined_call_operand.hbm [shape: f32[128,128], index: 4, kind: input, shape index: {}]   ;;  %s560_s5 = inlined_call_operand.vmem [shape: f32[1,128], index: 5, kind: input, shape index: {}]   ;;  %s561_s6 = inlined_call_operand.hbm [shape: f32[64,128], index: 6, kind: output, shape index: {}]  }
   0x1   :  { %12 = vsyncpa [#allocation4], 0  ;;  %s25_s23 = sshll.u32 %s559_s4, 4  ;;  %s401_s24 = smov [#allocation2]   ;;  %s26_s23 = int_to_ptr.hbm [resolvable:$true] %s25_s23 }
   0x2   :  { %s27_s25 = sshll.u32 %s401_s24, 4  ;;  %s402_s26 = smov 128   ;;  %s28_s25 = int_to_ptr.vmem [resolvable:$true] %s27_s25 }
   0x3   :  { %s403_s27 = smov 8  }
   0x4   :  { %33 = dma.hbm_to_vmem [thread:$0]  %s26_s23, 2048, %s28_s25, [#allocation3], %s402_s26, %s402_s26, %s403_s27  }
   0x5   :  { %397 = dma.done.wait [#allocation3], 2048  }
   0x6   :  { %398 = vsyncadd [#allocation3], 4294965248  ;;  %v49_v0 = vld [vmem:[%s556_s1 + $0x8] sm:$0xff]  ;;  %v48_v1 = vld [vmem:[%s556_s1] sm:$0xff]  ;;  %vm50_vm0 = vcmask 130048   ;;  %v404_v16 = vmov 64.0  }
   0x7   :  { %89 = vmatpush.msra.mxu0 %v49_v0  ;;  %v40_v2 = vld [vmem:[%s555_s0] sm:$0xff]  ;;  %v41_v3 = vld [vmem:[%s555_s0 + $0x8] sm:$0xff]  ;;  %v42_v4 = vld [vmem:[%s555_s0 + $0x10] sm:$0xff]  ;;  %345 = vrcp.f32 %v404_v16  ;;  %s286_s30 = sshll.u32 %s561_s6, 4  ;;  %s287_s30 = int_to_ptr.hbm [resolvable:$true] %s286_s30 }
   0x8   :  { %v43_v5 = vld [vmem:[%s555_s0 + $0x18] sm:$0xff]  ;;  %v44_v6 = vld [vmem:[%s555_s0 + $0x20] sm:$0xff]  ;;  %v45_v7 = vld [vmem:[%s555_s0 + $0x28] sm:$0xff] }
   0x9   :  { %90 = vmatpush.msra.mxu0 %v48_v1  ;;  %v46_v8 = vld [vmem:[%s555_s0 + $0x30] sm:$0xff]  ;;  %v47_v9 = vld [vmem:[%s555_s0 + $0x38] sm:$0xff]  ;;  %v224_v50 = vld [vmem:[#allocation2 + $0x68] sm:$0xff] }
   0xa   :  { %299 = vmatmul.msk.f32.vlgmr.msra.gmra.mxu0 %vm50_vm0, %v40_v2  ;;  %v226_v42 = vld [vmem:[#allocation2 + $0x78] sm:$0xff]  ;;  %v225_v46 = vld [vmem:[#allocation2 + $0x70] sm:$0xff]  ;;  %v223_v54 = vld [vmem:[#allocation2 + $0x60] sm:$0xff] }
   0xb   :  { %231 = vmatpush.msra.mxu1 %v226_v42  ;;  %307 = vmatpush.msra.mxu2 %v226_v42  ;;  %v222_v58 = vld [vmem:[#allocation2 + $0x58] sm:$0xff]  ;;  %v221_v62 = vld [vmem:[#allocation2 + $0x50] sm:$0xff]  ;;  %v220_v1 = vld [vmem:[#allocation2 + $0x48] sm:$0xff] }
   0xc   :  { %308 = vmatpush.msra.mxu3 %v226_v42  ;;  %v216_v16 = vld [vmem:[#allocation2 + $0x28] sm:$0xff] }
   0xd   :  { %v346_v20 = vpop.eup %345  ;;  %232 = vmatpush.msra.mxu1 %v225_v46  ;;  %309 = vmatpush.msra.mxu2 %v225_v46 }
   0xe   :  { %v130_v23 = vmul.f32 64.0, %v346_v20  ;;  %vm134_vm1 = vweird.f32 %v346_v20  ;;  %310 = vmatpush.msra.mxu3 %v225_v46 }
   0xf   :  { %233 = vmatpush.msra.mxu1 %v224_v50  ;;  %311 = vmatpush.msra.mxu2 %v224_v50 }
  0x10   :  { %v131_v27 = vsub.f32 1.0, %v130_v23  ;;  %312 = vmatpush.msra.mxu3 %v224_v50  ;;  %v213_v23 = vld [vmem:[#allocation2 + $0x10] sm:$0xff] }
  0x11   :  { %234 = vmatpush.msra.mxu1 %v223_v54  ;;  %313 = vmatpush.msra.mxu2 %v223_v54 }
  0x12   :  { %300 = vmatmul.msk.f32.gmra.mxu0 %vm50_vm0, %v41_v3  ;;  %v132_v30 = vmul.f32 %v346_v20, %v131_v27  ;;  %314 = vmatpush.msra.mxu3 %v223_v54  ;;  %v211_v27 = vld [vmem:[#allocation2] sm:$0xff] }
  0x13   :  { %235 = vmatpush.msra.mxu1 %v222_v58  ;;  %315 = vmatpush.msra.mxu2 %v222_v58 }
  0x14   :  { %v133_v33 = vadd.f32 %v346_v20, %v132_v30  ;;  %316 = vmatpush.msra.mxu3 %v222_v58 }
  0x15   :  { %236 = vmatpush.msra.mxu1 %v221_v62  ;;  %317 = vmatpush.msra.mxu2 %v221_v62 }
  0x16   :  { %v509_v36 = vsel %vm134_vm1, %v346_v20, %v133_v33  ;;  %318 = vmatpush.msra.mxu3 %v221_v62 }
  0x17   :  { %237 = vmatpush.msra.mxu1 %v220_v1  ;;  %319 = vmatpush.msra.mxu2 %v220_v1 }
  0x18   :  { %320 = vmatpush.msra.mxu3 %v220_v1 }
  0x1a   :  { %301 = vmatmul.msk.f32.gmra.mxu0 %vm50_vm0, %v42_v4  ;;  %v219_v4 = vld [vmem:[#allocation2 + $0x40] sm:$0xff] }
  0x1b   :  { %238 = vmatpush.msra.mxu1 %v219_v4  ;;  %321 = vmatpush.msra.mxu2 %v219_v4 }
  0x1c   :  { %322 = vmatpush.msra.mxu3 %v219_v4 }
  0x22   :  { %302 = vmatmul.msk.f32.gmra.mxu0 %vm50_vm0, %v43_v5 }
  0x2a   :  { %303 = vmatmul.msk.f32.gmra.mxu0 %vm50_vm0, %v44_v6  ;;  %v218_v6 = vld [vmem:[#allocation2 + $0x38] sm:$0xff] }
  0x2b   :  { %239 = vmatpush.msra.mxu1 %v218_v6  ;;  %323 = vmatpush.msra.mxu2 %v218_v6 }
  0x2c   :  { %324 = vmatpush.msra.mxu3 %v218_v6 }
  0x32   :  { %304 = vmatmul.msk.f32.gmra.mxu0 %vm50_vm0, %v45_v7 }
  0x3a   :  { %305 = vmatmul.msk.f32.gmra.mxu0 %vm50_vm0, %v46_v8  ;;  %v217_v8 = vld [vmem:[#allocation2 + $0x30] sm:$0xff] }
  0x3b   :  { %240 = vmatpush.msra.mxu1 %v217_v8  ;;  %325 = vmatpush.msra.mxu2 %v217_v8 }
  0x3c   :  { %326 = vmatpush.msra.mxu3 %v217_v8 }
  0x3d   :  { %241 = vmatpush.msra.mxu1 %v216_v16  ;;  %327 = vmatpush.msra.mxu2 %v216_v16 }
  0x3e   :  { %328 = vmatpush.msra.mxu3 %v216_v16 }
  0x42   :  { %306 = vmatmul.msk.f32.gmra.mxu0 %vm50_vm0, %v47_v9 }
  0x87   :  { %v485_v10 = vpop.f32.mrf.mxu0 }
  0x8f   :  { %v487_v11 = vpop.f32.mrf.mxu0 }
  0x90   :  { %v116_v17 = vadd.f32 %v487_v11, %v485_v10 }
  0x97   :  { %v489_v12 = vpop.f32.mrf.mxu0 }
  0x98   :  { %v117_v18 = vadd.f32 %v116_v17, %v489_v12 }
  0x9f   :  { %v491_v13 = vpop.f32.mrf.mxu0 }
  0xa0   :  { %v118_v21 = vadd.f32 %v117_v18, %v491_v13  ;;  %v215_v18 = vld [vmem:[#allocation2 + $0x20] sm:$0xff] }
  0xa1   :  { %242 = vmatpush.msra.mxu1 %v215_v18  ;;  %329 = vmatpush.msra.mxu2 %v215_v18 }
  0xa2   :  { %330 = vmatpush.msra.mxu3 %v215_v18 }
  0xa7   :  { %v493_v14 = vpop.f32.mrf.mxu0 }
  0xa8   :  { %v119_v22 = vadd.f32 %v118_v21, %v493_v14  ;;  %v214_v21 = vld [vmem:[#allocation2 + $0x18] sm:$0xff] }
  0xa9   :  { %243 = vmatpush.msra.mxu1 %v214_v21  ;;  %331 = vmatpush.msra.mxu2 %v214_v21 }
  0xaa   :  { %332 = vmatpush.msra.mxu3 %v214_v21 }
  0xab   :  { %244 = vmatpush.msra.mxu1 %v213_v23  ;;  %333 = vmatpush.msra.mxu2 %v213_v23 }
  0xac   :  { %334 = vmatpush.msra.mxu3 %v213_v23 }
  0xaf   :  { %v495_v15 = vpop.f32.mrf.mxu0 }
  0xb0   :  { %v120_v24 = vadd.f32 %v119_v22, %v495_v15 }
  0xb7   :  { %v500_v19 = vpop.f32.mrf.mxu0 }
  0xb8   :  { %v121_v25 = vadd.f32 %v120_v24, %v500_v19  ;;  %v212_v24 = vld [vmem:[#allocation2 + $0x8] sm:$0xff] }
  0xb9   :  { %245 = vmatpush.msra.mxu1 %v212_v24  ;;  %335 = vmatpush.msra.mxu2 %v212_v24 }
  0xba   :  { %336 = vmatpush.msra.mxu3 %v212_v24 }
  0xbb   :  { %246 = vmatpush.msra.mxu1 %v211_v27  ;;  %337 = vmatpush.msra.mxu2 %v211_v27 }
  0xbc   :  { %338 = vmatpush.msra.mxu3 %v211_v27 }
  0xbf   :  { %v506_v26 = vpop.f32.mrf.mxu0 }
  0xc0   :  { %v122_v28 = vadd.f32 %v121_v25, %v506_v26 }
  0xc2   :  { %v123_v29 = vrot.slane %v122_v28, 4 }
  0xc4   :  { %v124_v31 = vadd.f32 %v123_v29, %v122_v28 }
  0xc6   :  { %v125_v32 = vrot.slane %v124_v31, 2 }
  0xc8   :  { %v126_v34 = vadd.f32 %v125_v32, %v124_v31 }
  0xca   :  { %v127_v35 = vrot.slane %v126_v34, 1 }
  0xcc   :  { %v128_v37 = vadd.f32 %v127_v35, %v126_v34 }
  0xce   :  { %v512_v38 = vmul.f32 %v509_v36, %v128_v37 }
  0xd0   :  { %v137_v39 = vsub.f32 %v485_v10, %v512_v38  ;;  %v138_v40 = vsub.f32 %v487_v11, %v512_v38  ;;  %v139_v41 = vsub.f32 %v489_v12, %v512_v38  ;;  %v140_v43 = vsub.f32 %v491_v13, %v512_v38 }
  0xd1   :  { %v141_v47 = vsub.f32 %v493_v14, %v512_v38  ;;  %v142_v51 = vsub.f32 %v495_v15, %v512_v38  ;;  %v143_v55 = vsub.f32 %v500_v19, %v512_v38  ;;  %v144_v59 = vsub.f32 %v506_v26, %v512_v38 }
  0xd2   :  { %v145_v44 = vmul.f32 %v137_v39, %v137_v39  ;;  %v146_v45 = vmul.f32 %v138_v40, %v138_v40  ;;  %v147_v48 = vmul.f32 %v139_v41, %v139_v41  ;;  %v148_v52 = vmul.f32 %v140_v43, %v140_v43  ;;  %v180_v40 = vld [vmem:[%s558_s3] sm:$0x1] }
  0xd3   :  { %v149_v56 = vmul.f32 %v141_v47, %v141_v47  ;;  %v150_v60 = vmul.f32 %v142_v51, %v142_v51  ;;  %v151_v63 = vmul.f32 %v143_v55, %v143_v55  ;;  %v152_v2 = vmul.f32 %v144_v59, %v144_v59 }
  0xd4   :  { %v153_v49 = vadd.f32 %v146_v45, %v145_v44 }
  0xd6   :  { %v154_v53 = vadd.f32 %v153_v49, %v147_v48 }
  0xd8   :  { %v155_v57 = vadd.f32 %v154_v53, %v148_v52 }
  0xda   :  { %v156_v61 = vadd.f32 %v155_v57, %v149_v56 }
  0xdc   :  { %v157_v0 = vadd.f32 %v156_v61, %v150_v60 }
  0xde   :  { %v158_v3 = vadd.f32 %v157_v0, %v151_v63  ;;  %v344_v63 = vld [vmem:[%s560_s5] ss:$0 sm:$0xff]  ;;  %s405_s5 = smov [#allocation5]  }
  0xdf   :  { %s284_s25 = sshll.u32 %s405_s5, 4  ;;  %s285_s25 = int_to_ptr.vmem [resolvable:$true] %s284_s25 }
  0xe0   :  { %v159_v5 = vadd.f32 %v158_v3, %v152_v2 }
  0xe2   :  { %v160_v7 = vrot.slane %v159_v5, 4 }
  0xe4   :  { %v161_v9 = vadd.f32 %v160_v7, %v159_v5 }
  0xe6   :  { %v162_v17 = vrot.slane %v161_v9, 2 }
  0xe8   :  { %v163_v20 = vadd.f32 %v162_v17, %v161_v9 }
  0xea   :  { %v164_v22 = vrot.slane %v163_v20, 1 }
  0xec   :  { %v165_v25 = vadd.f32 %v164_v22, %v163_v20 }
  0xee   :  { %v166_v28 = vmul.f32 %v165_v25, %v509_v36  ;;  %v178_v36 = vld [vmem:[%s557_s2] sm:$0x1] }
  0xf0   :  { %v167_v29 = vadd.f32 1e-05, %v166_v28 }
  0xf2   :  { %347 = vrsqrt.f32 %v167_v29  ;;  %vm174_vm3 = vweird.f32 %v167_v29 }
  0xf8   :  { %v348_v30 = vpop.eup %347 }
  0xf9   :  { %v169_v31 = vmul.f32 %v348_v30, %v167_v29  ;;  %vm175_vm2 = vweird.f32 %v348_v30 }
  0xfa   :  { %vm176_vm4 = vmor %vm174_vm3, %vm175_vm2 }
  0xfb   :  { %v170_v32 = vmul.f32 %v348_v30, %v169_v31 }
  0xfd   :  { %v171_v33 = vmul.f32 0.5, %v170_v32 }
  0xff   :  { %v172_v34 = vsub.f32 1.5, %v171_v33 }
 0x101   :  { %v173_v35 = vmul.f32 %v348_v30, %v172_v34 }
 0x103   :  { %v177_v37 = vsel %vm176_vm4, %v348_v30, %v173_v35 }
 0x104   :  { %v179_v39 = vmul.f32 %v178_v36, %v177_v37 }
 0x106   :  { %v181_v41 = vmul.f32 %v179_v39, %v512_v38  ;;  %v183_v42 = vperm.slane %v179_v39, 0 }
 0x108   :  { %v182_v43 = vsub.f32 %v180_v40, %v181_v41  ;;  %v184_v45 = vmul.f32 %v183_v42, %v485_v10  ;;  %v187_v46 = vmul.f32 %v183_v42, %v491_v13  ;;  %v188_v47 = vmul.f32 %v183_v42, %v493_v14 }
 0x109   :  { %v185_v54 = vmul.f32 %v183_v42, %v487_v11  ;;  %v189_v38 = vmul.f32 %v183_v42, %v495_v15  ;;  %v186_v13 = vmul.f32 %v183_v42, %v489_v12  ;;  %v190_v14 = vmul.f32 %v183_v42, %v500_v19 }
 0x10a   :  { %v193_v44 = vperm.slane %v182_v43, 0  ;;  %v191_v11 = vmul.f32 %v183_v42, %v506_v26 }
 0x10c   :  { %v195_v48 = vadd.f32 %v193_v44, %v184_v45  ;;  %v198_v49 = vadd.f32 %v193_v44, %v187_v46  ;;  %v199_v50 = vadd.f32 %v193_v44, %v188_v47  ;;  %v196_v55 = vadd.f32 %v193_v44, %v185_v54 }
 0x10d   :  { %v200_v56 = vadd.f32 %v193_v44, %v189_v38  ;;  %v197_v58 = vadd.f32 %v193_v44, %v186_v13  ;;  %v201_v59 = vadd.f32 %v193_v44, %v190_v14  ;;  %v202_v62 = vadd.f32 %v193_v44, %v191_v11 }
 0x10e   :  { %v203_v51 = vmax.f32 %v195_v48, 0.0  ;;  %v206_v52 = vmax.f32 %v198_v49, 0.0  ;;  %v207_v53 = vmax.f32 %v199_v50, 0.0  ;;  %v204_v10 = vmax.f32 %v196_v55, 0.0 }
 0x10f   :  { %v208_v57 = vmax.f32 %v200_v56, 0.0  ;;  %v205_v60 = vmax.f32 %v197_v58, 0.0  ;;  %v209_v61 = vmax.f32 %v201_v59, 0.0  ;;  %v210_v15 = vmax.f32 %v202_v62, 0.0 }
 0x110   :  { %247 = vmatmul.f32.vlgmr.msra.gmra.mxu1 %v203_v51  ;;  %256 = vmatmul.f32.vlgmr.msra.gmra.mxu2 %v206_v52 }
 0x111   :  { %259 = vmatmul.f32.vlgmr.msra.gmra.mxu3 %v207_v53 }
 0x118   :  { %250 = vmatmul.f32.gmra.mxu1 %v204_v10 }
 0x119   :  { %262 = vmatmul.f32.gmra.mxu3 %v208_v57 }
 0x120   :  { %253 = vmatmul.f32.gmra.mxu1 %v205_v60 }
 0x121   :  { %265 = vmatmul.f32.gmra.mxu3 %v209_v61 }
 0x129   :  { %268 = vmatmul.f32.gmra.mxu3 %v210_v15 }
 0x18d   :  { %v248_v0 = vpop.f32.mrf.mxu1 }
 0x18e   :  { %v249_v12 = vadd.f32 %v344_v63, %v248_v0 }
 0x190   :  { %272 = vst [vmem:[#allocation5] sm:$0xff] %v249_v12 }
 0x193   :  { %v257_v1 = vpop.f32.mrf.mxu2 }
 0x194   :  { %v258_v19 = vadd.f32 %v344_v63, %v257_v1  ;;  %v260_v2 = vpop.f32.mrf.mxu3 }
 0x195   :  { %v261_v3 = vadd.f32 %v344_v63, %v260_v2  ;;  %v251_v4 = vpop.f32.mrf.mxu1 }
 0x196   :  { %275 = vst [vmem:[#allocation5 + $0x18] sm:$0xff] %v258_v19  ;;  %v252_v5 = vadd.f32 %v344_v63, %v251_v4 }
 0x197   :  { %276 = vst [vmem:[#allocation5 + $0x20] sm:$0xff] %v261_v3 }
 0x198   :  { %273 = vst [vmem:[#allocation5 + $0x8] sm:$0xff] %v252_v5 }
 0x19c   :  { %v263_v26 = vpop.f32.mrf.mxu3 }
 0x19d   :  { %v264_v6 = vadd.f32 %v344_v63, %v263_v26  ;;  %v254_v7 = vpop.f32.mrf.mxu1 }
 0x19e   :  { %v255_v8 = vadd.f32 %v344_v63, %v254_v7 }
 0x19f   :  { %277 = vst [vmem:[#allocation5 + $0x28] sm:$0xff] %v264_v6 }
 0x1a0   :  { %274 = vst [vmem:[#allocation5 + $0x10] sm:$0xff] %v255_v8 }
 0x1a4   :  { %v266_v9 = vpop.f32.mrf.mxu3 }
 0x1a5   :  { %v267_v16 = vadd.f32 %v344_v63, %v266_v9 }
 0x1a7   :  { %278 = vst [vmem:[#allocation5 + $0x30] sm:$0xff] %v267_v16 }
 0x1ac   :  { %v269_v17 = vpop.f32.mrf.mxu3 }
 0x1ad   :  { %v270_v18 = vadd.f32 %v344_v63, %v269_v17 }
 0x1af   :  { %279 = vst [vmem:[#allocation5 + $0x38] sm:$0xff] %v270_v18 }
 0x1b0   :  { %292 = dma.vmem_to_hbm [thread:$0]  %s285_s25, 1024, %s287_s30, [#allocation4], %s402_s26, %s402_s26, %s403_s27  }
 0x1b1   :  { %399 = dma.done.wait [#allocation4], 1024  }
 0x1b2   :  { %400 = vsyncadd [#allocation4], 4294966272 }
 0x1b3   :  { %297 = vsyncpa [#allocation3], 1 }
 0x1b4   :  { %298 = vsyncpa [#allocation4], 1 }

</bundles_post_ra>
